<compile_context>
chip_gen: v6e
topology: v6e:2x2x1
jax: 0.10.0
libtpu: 0.0.40
codegen_flags: <defaults>
</compile_context>

<pallas_src>
import jax
import jax.numpy as jnp
from jax.experimental import pallas as pl
from jax.experimental.pallas import tpu as pltpu


def _affine_kernel(x_ref, alpha_ref, beta_ref, o_ref):
    # x_ref: (TM, D) row tile; alpha_ref/beta_ref: (1, D), resident in VMEM
    # (constant index_map).  Broadcast over rows happens in the VPU fma.
    o_ref[...] = x_ref[...] * alpha_ref[...] + beta_ref[...]


def affine_transform(x, alpha, beta, *, target_block_bytes=4 * 1024 * 1024):
    """y = alpha * x + beta, with alpha/beta broadcasting over all but the last dim."""
    orig_shape = x.shape
    D = orig_shape[-1]
    assert alpha.shape[-1] == D and beta.shape[-1] == D

    dtype = x.dtype
    itemsize = jnp.dtype(dtype).itemsize
    # Minimum sublane multiple for this dtype (f32: 8, bf16: 16, int8/fp8: 32).
    sublane = max(8, 32 // itemsize)

    # Flatten every leading dim into one row axis; keep features on lanes.
    x2 = x.reshape(-1, D)
    a2 = alpha.reshape(1, D).astype(dtype)
    b2 = beta.reshape(1, D).astype(dtype)
    R = x2.shape[0]

    # Row tile sized so one (TM, D) buffer is ~target_block_bytes.
    rows_target = max(sublane, target_block_bytes // max(D * itemsize, 1))
    rows_target = (rows_target // sublane) * sublane

    if R <= rows_target:
        # Full-extent block on the row axis: always layout-legal, single step.
        tm = R
        r_pad = R
    else:
        tm = rows_target
        r_pad = pl.cdiv(R, tm) * tm
        if r_pad != R:
            # Zero-pad the tail tile; padding is sliced off below.
            x2 = jnp.pad(x2, ((0, r_pad - R), (0, 0)))

    grid = (r_pad // tm,)

    cost = pl.CostEstimate(
        flops=2 * R * D,
        transcendentals=0,
        bytes_accessed=(2 * R * D + 2 * D) * itemsize,
    )

    out2 = pl.pallas_call(
        _affine_kernel,
        out_shape=jax.ShapeDtypeStruct((r_pad, D), dtype),
        grid_spec=pltpu.PrefetchScalarGridSpec(
            num_scalar_prefetch=0,
            grid=grid,
            in_specs=[
                pl.BlockSpec((tm, D), lambda i: (i, 0)),   # x row tile
                pl.BlockSpec((1, D), lambda i: (0, 0)),    # alpha (resident)
                pl.BlockSpec((1, D), lambda i: (0, 0)),    # beta  (resident)
            ],
            out_specs=pl.BlockSpec((tm, D), lambda i: (i, 0)),
        ),
        compiler_params=pltpu.CompilerParams(
            dimension_semantics=("parallel",),
            vmem_limit_bytes=32 * 1024 * 1024,
        ),
        cost_estimate=cost,
    )(x2, a2, b2)

    if r_pad != R:
        out2 = out2[:R]
    return out2.reshape(orig_shape)


if __name__ == "__main__":
    key = jax.random.PRNGKey(0)

    B, N, D = 2, 8, 256   # batch, tokens, num_features

    kx, ka, kb = jax.random.split(key, 3)
    x = jax.random.normal(kx, (B, N, D), dtype=jnp.float32)

    # nn.Parameter(torch.ones/zeros) init, perturbed deterministically so the
    # affine is non-trivial.
    alpha = jnp.ones((1, 1, D), dtype=jnp.float32) \
        + 0.1 * jax.random.normal(ka, (1, 1, D), dtype=jnp.float32)
    beta = jnp.zeros((1, 1, D), dtype=jnp.float32) \
        + 0.1 * jax.random.normal(kb, (1, 1, D), dtype=jnp.float32)

    y = affine_transform(x, alpha, beta)
    y = jax.block_until_ready(y)

    # Reference check in plain JAX.
    y_ref = alpha * x + beta
    assert y.shape == (B, N, D)
    assert jnp.allclose(y, y_ref, atol=1e-6, rtol=1e-6)

    print("KERNEL_OK")
</pallas_src>

<mosaic_0001>
module attributes {stable_mosaic.version = 11 : i64} {
  func.func @_affine_kernel(%arg0: i32, %arg1: memref<16x256xf32, #tpu.memory_space<vmem>>, %arg2: memref<1x256xf32, #tpu.memory_space<vmem>>, %arg3: memref<1x256xf32, #tpu.memory_space<vmem>>, %arg4: memref<16x256xf32, #tpu.memory_space<vmem>>) attributes {dimension_semantics = [#tpu.dimension_semantics<parallel>], iteration_bounds = array<i64: 1>, scalar_prefetch = 0 : i64, scratch_operands = 0 : i64, tpu.core_type = #tpu.core_type<tc>, window_params = [{transform_indices = @transform_0, window_bounds = array<i64: 16, 256>}, {pipeline_mode = #tpu.pipeline_mode<synchronous>, transform_indices = @transform_1, window_bounds = array<i64: 1, 256>}, {pipeline_mode = #tpu.pipeline_mode<synchronous>, transform_indices = @transform_2, window_bounds = array<i64: 1, 256>}, {transform_indices = @transform_3, window_bounds = array<i64: 16, 256>}]} {
    %c0 = arith.constant 0 : index
    %c0_0 = arith.constant 0 : index
    %0 = vector.load %arg1[%c0, %c0_0] : memref<16x256xf32, #tpu.memory_space<vmem>>, vector<16x256xf32>
    %c0_1 = arith.constant 0 : index
    %c0_2 = arith.constant 0 : index
    %1 = vector.load %arg2[%c0_1, %c0_2] : memref<1x256xf32, #tpu.memory_space<vmem>>, vector<1x256xf32>
    %2 = vector.broadcast %1 : vector<1x256xf32> to vector<16x256xf32>
    %3 = arith.mulf %0, %2 : vector<16x256xf32>
    %c0_3 = arith.constant 0 : index
    %c0_4 = arith.constant 0 : index
    %4 = vector.load %arg3[%c0_3, %c0_4] : memref<1x256xf32, #tpu.memory_space<vmem>>, vector<1x256xf32>
    %5 = vector.broadcast %4 : vector<1x256xf32> to vector<16x256xf32>
    %6 = arith.addf %3, %5 : vector<16x256xf32>
    %c0_5 = arith.constant 0 : index
    %c0_6 = arith.constant 0 : index
    %7 = vector.load %arg4[%c0_5, %c0_6] : memref<16x256xf32, #tpu.memory_space<vmem>>, vector<16x256xf32>
    tpu.vector_store %arg4[%c0_5, %c0_6], %6 {strides = array<i32>} : memref<16x256xf32, #tpu.memory_space<vmem>>, vector<16x256xf32>,
    return
  }
  func.func @transform_0(%arg0: i32) -> (i32, i32) {
    %c0_i32 = arith.constant 0 : i32
    %c0_i32_0 = arith.constant 0 : i32
    return %arg0, %c0_i32 : i32, i32
  }
  func.func @transform_1(%arg0: i32) -> (i32, i32) {
    %c0_i32 = arith.constant 0 : i32
    %c0_i32_0 = arith.constant 0 : i32
    %c0_i32_1 = arith.constant 0 : i32
    return %c0_i32, %c0_i32_0 : i32, i32
  }
  func.func @transform_2(%arg0: i32) -> (i32, i32) {
    %c0_i32 = arith.constant 0 : i32
    %c0_i32_0 = arith.constant 0 : i32
    %c0_i32_1 = arith.constant 0 : i32
    return %c0_i32, %c0_i32_0 : i32, i32
  }
  func.func @transform_3(%arg0: i32) -> (i32, i32) {
    %c0_i32 = arith.constant 0 : i32
    %c0_i32_0 = arith.constant 0 : i32
    return %arg0, %c0_i32 : i32, i32
  }
}

</mosaic_0001>

<bundles_post_ra>
// kernel: tpu_custom_call.1
= control target key start
LH: loop header
LB: loop body
LE: loop exit
PB: predicated region body
PF: predicated region fallthrough
CT: control target
= control target key end

     0   :  { %8 = vsyncpa [#allocation3], 0  ;;  %s213_s0 = inlined_call_operand.hbm [shape: f32[16,256], index: 0, kind: input, shape index: {}]   ;;  %s214_s1 = inlined_call_operand.hbm [shape: f32[1,256], index: 1, kind: input, shape index: {}]   ;;  %s215_s2 = inlined_call_operand.vmem [shape: f32[1,256], index: 2, kind: input, shape index: {}]   ;;  %s216_s3 = inlined_call_operand.hbm [shape: f32[16,256], index: 3, kind: output, shape index: {}]  }
   0x1   :  { %9 = vsyncpa [#allocation6], 0 }
   0x2   :  { %10 = vsyncpa [#allocation4], 0  ;;  %s170_s12 = smov [#allocation2]  }
   0x3   :  { %s16_s13 = sshll.u32 %s170_s12, 4  ;;  %s17_s13 = int_to_ptr.vmem [resolvable:$true] %s16_s13 }
   0x4   :  { %s112_s14 = scalar_lea.vmem %s17_s13, 512  ;;  %p117_p1 = scmp.lt.s32.totalorder %s17_s13, %s17_s13 }
   0x5   :  { %p113_p0 = scmp.ne.s32.totalorder %s17_s13, %s112_s14  ;;  %p118_p2 = scmp.lt.s32.totalorder %s112_s14, %s112_s14 }
   0x7   :  { %p119_p3 = por %p118_p2, %p117_p1 }
   0x9   :  { %p120_p4 = pnand %p119_p3, %p113_p0 }
   0xb   :  { %123 = shalt.err (!%p120_p4)
}
   0xc   :  { %s171_s15 = smov 256   ;;  %s172_s16 = smov 16  }
   0xd   :  { %22 = dma.hbm_to_vmem [thread:$0]  %s213_s0, 512, %s17_s13, [#allocation3], %s171_s15, %s171_s15, %s172_s16  }
   0xe   :  { %s173_s19 = smov [#allocation5]  }
   0xf   :  { %s29_s20 = sshll.u32 %s173_s19, 4  ;;  %s30_s20 = int_to_ptr.vmem [resolvable:$true] %s29_s20 }
  0x10   :  { %s132_s21 = scalar_lea.vmem %s30_s20, 32  ;;  %p137_p6 = scmp.lt.s32.totalorder %s30_s20, %s30_s20 }
  0x11   :  { %p133_p5 = scmp.ne.s32.totalorder %s30_s20, %s132_s21  ;;  %p138_p7 = scmp.lt.s32.totalorder %s132_s21, %s132_s21 }
  0x13   :  { %p139_p8 = por %p138_p7, %p137_p6 }
  0x15   :  { %p140_p9 = pnand %p139_p8, %p133_p5 }
  0x17   :  { %143 = shalt.err (!%p140_p9)
}
  0x18   :  { %32 = dma.hbm_to_vmem [thread:$0]  %s214_s1, 32, %s30_s20, [#allocation6]  }
  0x19   :  { %164 = dma.done.wait [#allocation3], 512  }
  0x1a   :  { %165 = vsyncadd [#allocation3], 4294966784 }
  0x1b   :  { %166 = dma.done.wait [#allocation6], 32  }
  0x1c   :  { %167 = vsyncadd [#allocation6], 4294967264  ;;  %v47_v0 = vlaneseq  ;;  %v41_v4 = vld [vmem:[#allocation2] sm:$0xff]  ;;  %v42_v9 = vld [vmem:[#allocation2 + $0x8] sm:$0xff]  ;;  %s174_s1 = smov [#allocation7]  }
  0x1d   :  { %v45_v5 = vld [vmem:[#allocation5] sm:$0x3]  ;;  %v43_v12 = vld [vmem:[#allocation2 + $0x10] sm:$0xff]  ;;  %v44_v13 = vld [vmem:[#allocation2 + $0x18] sm:$0xff]  ;;  %s86_s25 = sshll.u32 %s174_s1, 4  ;;  %s87_s25 = int_to_ptr.vmem [resolvable:$true] %s86_s25 }
  0x1e   :  { %v48_v1 = vshrl.u32 %v47_v0, 7  ;;  %v61_v6 = vld [vmem:[%s215_s2] sm:$0x3]  ;;  %s144_s2 = scalar_lea.vmem %s87_s25, 512  ;;  %p149_p11 = scmp.lt.s32.totalorder %s87_s25, %s87_s25 }
  0x1f   :  { %p145_p10 = scmp.ne.s32.totalorder %s87_s25, %s144_s2  ;;  %p150_p12 = scmp.lt.s32.totalorder %s144_s2, %s144_s2 }
  0x20   :  { %v49_v2 = vsub.s32 0, %v48_v1  ;;  %v53_v3 = vsub.s32 1, %v48_v1 }
  0x21   :  { %p151_p13 = por %p150_p12, %p149_p11 }
  0x22   :  { %v50_v7 = vrot.slane %v45_v5, %v49_v2  ;;  %v66_v8 = vrot.slane %v61_v6, %v49_v2  ;;  %v54_v10 = vrot.slane %v45_v5, %v53_v3  ;;  %v70_v11 = vrot.slane %v61_v6, %v53_v3 }
  0x23   :  { %p152_p0 = pnand %p151_p13, %p145_p10 }
  0x24   :  { %v57_v14 = vmul.f32 %v50_v7, %v41_v4  ;;  %v58_v15 = vmul.f32 %v54_v10, %v42_v9  ;;  %v59_v16 = vmul.f32 %v50_v7, %v43_v12  ;;  %v60_v17 = vmul.f32 %v54_v10, %v44_v13 }
  0x26   :  { %v73_v18 = vadd.f32 %v66_v8, %v57_v14  ;;  %v74_v19 = vadd.f32 %v70_v11, %v58_v15  ;;  %v75_v20 = vadd.f32 %v66_v8, %v59_v16  ;;  %v76_v21 = vadd.f32 %v70_v11, %v60_v17 }
  0x28   :  { %77 = vst [vmem:[#allocation7] sm:$0xff] %v73_v18  ;;  %78 = vst [vmem:[#allocation7 + $0x8] sm:$0xff] %v74_v19 }
  0x29   :  { %79 = vst [vmem:[#allocation7 + $0x10] sm:$0xff] %v75_v20  ;;  %80 = vst [vmem:[#allocation7 + $0x18] sm:$0xff] %v76_v21 }
  0x2a   :  { %155 = shalt.err (!%p152_p0)
}
  0x2b   :  { %92 = dma.vmem_to_hbm [thread:$0]  %s87_s25, 512, %s216_s3, [#allocation4], %s171_s15, %s171_s15, %s172_s16  }
  0x2c   :  { %168 = dma.done.wait [#allocation4], 512  }
  0x2d   :  { %169 = vsyncadd [#allocation4], 4294966784 }
  0x2e   :  { %96 = vsyncpa [#allocation3], 1 }
  0x2f   :  { %97 = vsyncpa [#allocation6], 1 }
  0x30   :  { %98 = vsyncpa [#allocation4], 1 }

</bundles_post_ra>
